<compile_context>
chip_gen: v6e
topology: v6e:2x2x1
jax: 0.10.0
libtpu: 0.0.40
codegen_flags: <defaults>
</compile_context>

<pallas_src>
import functools

import jax
import jax.numpy as jnp
from jax.experimental import pallas as pl
from jax.experimental.pallas import tpu as pltpu


def _round_up(x, m):
    return (x + m - 1) // m * m


def _channelmix_kernel(xk_ref, xr_ref, wk_ref, wv_ref, wr_ref, o_ref, acc_ref):
    h = pl.program_id(1)

    @pl.when(h == 0)
    def _init():
        acc_ref[...] = jnp.zeros_like(acc_ref)

    # key -> relu^2 -> value, accumulated over hidden (3C) chunks
    k = jnp.dot(xk_ref[...], wk_ref[...], preferred_element_type=jnp.float32)
    k = jnp.maximum(k, 0.0)
    k = k * k
    acc_ref[...] += jnp.dot(k.astype(wv_ref.dtype), wv_ref[...],
                            preferred_element_type=jnp.float32)

    @pl.when(h == pl.num_programs(1) - 1)
    def _finalize():
        r = jnp.dot(xr_ref[...], wr_ref[...], preferred_element_type=jnp.float32)
        o_ref[...] = (jax.nn.sigmoid(r) * acc_ref[...]).astype(o_ref.dtype)


@functools.partial(jax.jit, static_argnames=("compute_dtype",))
def rwkv_channelmix(x, time_maa_k, time_maa_r, wk, wv, wr,
                    compute_dtype=jnp.bfloat16):
    """RWKV_ChannelMix_x051a forward.  Weights are in (in, out) layout."""
    B, T, C = x.shape
    H = wk.shape[1]  # 3 * C
    assert wk.shape == (C, H) and wv.shape == (H, C) and wr.shape == (C, C)

    maa_k = jnp.reshape(time_maa_k, (-1,)).astype(x.dtype)
    maa_r = jnp.reshape(time_maa_r, (-1,)).astype(x.dtype)

    # time_shift (ZeroPad2d((0,0,1,-1))): xs[:, t] = x[:, t-1], zeros at t=0
    xs = jnp.pad(x, ((0, 0), (1, 0), (0, 0)))[:, :-1, :]
    # FMA-friendly token mix (precomputed outside the hot loop)
    xk = x * (1.0 - maa_k) + xs * maa_k
    xr = x * (1.0 - maa_r) + xs * maa_r

    # ---- tiling / padding -------------------------------------------------
    R = B * T
    TM = min(256, _round_up(R, 8))          # row tile (sublane-aligned)
    Rp = _round_up(R, TM)
    Cp = _round_up(C, 128)                  # lane-dense output / matmul dims
    Hp = _round_up(H, 128)
    if Hp % 512 == 0:
        TH = 512
    elif Hp % 256 == 0:
        TH = 256
    else:
        TH = 128
    TH = min(TH, Hp)

    def pad2(a, rows, cols):
        return jnp.pad(a, ((0, rows - a.shape[0]), (0, cols - a.shape[1])))

    xk_p = pad2(xk.reshape(R, C), Rp, Cp).astype(compute_dtype)
    xr_p = pad2(xr.reshape(R, C), Rp, Cp).astype(compute_dtype)
    wk_p = pad2(wk, Cp, Hp).astype(compute_dtype)
    wv_p = pad2(wv, Hp, Cp).astype(compute_dtype)
    wr_p = pad2(wr, Cp, Cp).astype(compute_dtype)

    grid = (Rp // TM, Hp // TH)

    out_p = pl.pallas_call(
        _channelmix_kernel,
        out_shape=jax.ShapeDtypeStruct((Rp, Cp), x.dtype),
        grid_spec=pltpu.PrefetchScalarGridSpec(
            num_scalar_prefetch=0,
            grid=grid,
            in_specs=[
                pl.BlockSpec((TM, Cp), lambda r, h: (r, 0)),   # xk row tile
                pl.BlockSpec((TM, Cp), lambda r, h: (r, 0)),   # xr row tile
                pl.BlockSpec((Cp, TH), lambda r, h: (0, h)),   # Wk chunk
                pl.BlockSpec((TH, Cp), lambda r, h: (h, 0)),   # Wv chunk
                pl.BlockSpec((Cp, Cp), lambda r, h: (0, 0)),   # Wr (resident)
            ],
            out_specs=pl.BlockSpec((TM, Cp), lambda r, h: (r, 0)),
            scratch_shapes=[pltpu.VMEM((TM, Cp), jnp.float32)],  # v accumulator
        ),
        compiler_params=pltpu.CompilerParams(
            dimension_semantics=("parallel", "arbitrary"),
            vmem_limit_bytes=48 * 1024 * 1024,
        ),
    )(xk_p, xr_p, wk_p, wv_p, wr_p)

    # dropout with p=0.0 (eval) is identity
    return out_p[:R, :C].reshape(B, T, C)


# ---------------------------- references ------------------------------------
def reference_f32(x, time_maa_k, time_maa_r, wk, wv, wr):
    maa_k = jnp.reshape(time_maa_k, (1, 1, -1))
    maa_r = jnp.reshape(time_maa_r, (1, 1, -1))
    xs = jnp.pad(x, ((0, 0), (1, 0), (0, 0)))[:, :-1, :]
    xx = xs - x
    xk = x + xx * maa_k
    xr = x + xx * maa_r
    k = jnp.maximum(xk @ wk, 0.0) ** 2
    v = k @ wv
    return jax.nn.sigmoid(xr @ wr) * v


def reference_mixed(x, time_maa_k, time_maa_r, wk, wv, wr):
    # mimics the kernel's bf16-operand / f32-accumulation numerics
    bf = jnp.bfloat16
    maa_k = jnp.reshape(time_maa_k, (1, 1, -1))
    maa_r = jnp.reshape(time_maa_r, (1, 1, -1))
    xs = jnp.pad(x, ((0, 0), (1, 0), (0, 0)))[:, :-1, :]
    xk = (x * (1.0 - maa_k) + xs * maa_k).astype(bf)
    xr = (x * (1.0 - maa_r) + xs * maa_r).astype(bf)
    k = jnp.einsum("btc,ch->bth", xk, wk.astype(bf),
                   preferred_element_type=jnp.float32)
    k = jnp.maximum(k, 0.0) ** 2
    v = jnp.einsum("bth,hc->btc", k.astype(bf), wv.astype(bf),
                   preferred_element_type=jnp.float32)
    r = jnp.einsum("btc,cd->btd", xr, wr.astype(bf),
                   preferred_element_type=jnp.float32)
    return jax.nn.sigmoid(r) * v


if __name__ == "__main__":
    def make_inputs(key, B, T, C, layer_id, n_layer):
        # deterministic RWKV-style time_maa init (matches the module's __init__)
        ratio_1_to_almost0 = 1.0 - layer_id / n_layer
        ddd = (jnp.arange(C, dtype=jnp.float32) / C).reshape(1, 1, C)
        time_maa_k = 1.0 - jnp.power(ddd, ratio_1_to_almost0)
        time_maa_r = 1.0 - jnp.power(ddd, ratio_1_to_almost0)
        kx, kk, kv, kr = jax.random.split(key, 4)
        H = 3 * C
        x = jax.random.normal(kx, (B, T, C), dtype=jnp.float32)
        wk = jax.random.normal(kk, (C, H), dtype=jnp.float32) * 0.02
        wv = jax.random.normal(kv, (H, C), dtype=jnp.float32) * 0.02
        wr = jax.random.normal(kr, (C, C), dtype=jnp.float32) * 0.02
        return x, time_maa_k, time_maa_r, wk, wv, wr

    key = jax.random.PRNGKey(0)
    k1, k2 = jax.random.split(key)

    configs = [
        # (B, T, C, layer_id, n_layer)
        (2, 8, 32, 0, 4),      # tiny config matching the module defaults
        (2, 160, 128, 2, 6),   # exercises 2 row tiles + 3 hidden chunks + row padding
    ]
    for cfg_key, (B, T, C, layer_id, n_layer) in zip((k1, k2), configs):
        args = make_inputs(cfg_key, B, T, C, layer_id, n_layer)
        out = jax.block_until_ready(rwkv_channelmix(*args))
        assert out.shape == (B, T, C) and out.dtype == args[0].dtype

        ref_m = reference_mixed(*args)
        ref_f = reference_f32(*args)
        assert jnp.allclose(out, ref_m, atol=2e-4, rtol=2e-3), \
            f"mismatch vs mixed-precision reference for cfg {(B, T, C)}"
        assert jnp.allclose(out, ref_f, atol=2e-3, rtol=5e-2), \
            f"mismatch vs f32 reference for cfg {(B, T, C)}"

    print("KERNEL_OK")
</pallas_src>

<mosaic_0001>
module attributes {stable_mosaic.version = 11 : i64} {
  func.func @_channelmix_kernel(%arg0: i32, %arg1: i32, %arg2: memref<16x128xbf16, #tpu.memory_space<vmem>>, %arg3: memref<16x128xbf16, #tpu.memory_space<vmem>>, %arg4: memref<128x128xbf16, #tpu.memory_space<vmem>>, %arg5: memref<128x128xbf16, #tpu.memory_space<vmem>>, %arg6: memref<128x128xbf16, #tpu.memory_space<vmem>>, %arg7: memref<16x128xf32, #tpu.memory_space<vmem>>, %arg8: memref<16x128xf32, #tpu.memory_space<vmem>>) attributes {dimension_semantics = [#tpu.dimension_semantics<parallel>, #tpu.dimension_semantics<arbitrary>], iteration_bounds = array<i64: 1, 1>, scalar_prefetch = 0 : i64, scratch_operands = 1 : i64, tpu.core_type = #tpu.core_type<tc>, window_params = [{transform_indices = @transform_0, window_bounds = array<i64: 16, 128>}, {transform_indices = @transform_1, window_bounds = array<i64: 16, 128>}, {transform_indices = @transform_2, window_bounds = array<i64: 128, 128>}, {transform_indices = @transform_3, window_bounds = array<i64: 128, 128>}, {pipeline_mode = #tpu.pipeline_mode<synchronous>, transform_indices = @transform_4, window_bounds = array<i64: 128, 128>}, {transform_indices = @transform_5, window_bounds = array<i64: 16, 128>}]} {
    %c0_i32 = arith.constant 0 : i32
    %0 = arith.cmpi eq, %arg1, %c0_i32 : i32
    %1 = arith.extui %0 : i1 to i32
    %c0_i32_0 = arith.constant 0 : i32
    %2 = arith.cmpi ne, %1, %c0_i32_0 : i32
    scf.if %2 {
      %cst_14 = arith.constant 0.000000e+00 : f32
      %18 = vector.broadcast %cst_14 : f32 to vector<16x128xf32>
      %c0_15 = arith.constant 0 : index
      %c0_16 = arith.constant 0 : index
      %19 = vector.load %arg8[%c0_15, %c0_16] : memref<16x128xf32, #tpu.memory_space<vmem>>, vector<16x128xf32>
      tpu.vector_store %arg8[%c0_15, %c0_16], %18 {strides = array<i32>} : memref<16x128xf32, #tpu.memory_space<vmem>>, vector<16x128xf32>,
    } else {
    }
    %c0 = arith.constant 0 : index
    %c0_1 = arith.constant 0 : index
    %3 = vector.load %arg2[%c0, %c0_1] : memref<16x128xbf16, #tpu.memory_space<vmem>>, vector<16x128xbf16>
    %c0_2 = arith.constant 0 : index
    %c0_3 = arith.constant 0 : index
    %4 = vector.load %arg4[%c0_2, %c0_3] : memref<128x128xbf16, #tpu.memory_space<vmem>>, vector<128x128xbf16>
    %cst = arith.constant dense<0.000000e+00> : vector<16x128xf32>
    %5 = tpu.matmul %3, %4, %cst {dimension_numbers = #tpu.dot_dimension_numbers<[1], [0], [0], [1], [0, 0, 1, 1], [], []>} : vector<16x128xbf16>, vector<128x128xbf16>, vector<16x128xf32> -> vector<16x128xf32>
    %cst_4 = arith.constant 0.000000e+00 : f32
    %6 = vector.broadcast %cst_4 : f32 to vector<16x128xf32>
    %7 = arith.maximumf %5, %6 : vector<16x128xf32>
    %8 = arith.mulf %7, %7 : vector<16x128xf32>
    %c0_5 = arith.constant 0 : index
    %c0_6 = arith.constant 0 : index
    %9 = vector.load %arg8[%c0_5, %c0_6] : memref<16x128xf32, #tpu.memory_space<vmem>>, vector<16x128xf32>
    %10 = arith.truncf %8 : vector<16x128xf32> to vector<16x128xbf16>
    %c0_7 = arith.constant 0 : index
    %c0_8 = arith.constant 0 : index
    %11 = vector.load %arg5[%c0_7, %c0_8] : memref<128x128xbf16, #tpu.memory_space<vmem>>, vector<128x128xbf16>
    %cst_9 = arith.constant dense<0.000000e+00> : vector<16x128xf32>
    %12 = tpu.matmul %10, %11, %cst_9 {dimension_numbers = #tpu.dot_dimension_numbers<[1], [0], [0], [1], [0, 0, 1, 1], [], []>} : vector<16x128xbf16>, vector<128x128xbf16>, vector<16x128xf32> -> vector<16x128xf32>
    %13 = arith.addf %9, %12 : vector<16x128xf32>
    %c0_10 = arith.constant 0 : index
    %c0_11 = arith.constant 0 : index
    %14 = vector.load %arg8[%c0_10, %c0_11] : memref<16x128xf32, #tpu.memory_space<vmem>>, vector<16x128xf32>
    tpu.vector_store %arg8[%c0_10, %c0_11], %13 {strides = array<i32>} : memref<16x128xf32, #tpu.memory_space<vmem>>, vector<16x128xf32>,
    %c0_i32_12 = arith.constant 0 : i32
    %15 = arith.cmpi eq, %arg1, %c0_i32_12 : i32
    %16 = arith.extui %15 : i1 to i32
    %c0_i32_13 = arith.constant 0 : i32
    %17 = arith.cmpi ne, %16, %c0_i32_13 : i32
    scf.if %17 {
      %c0_14 = arith.constant 0 : index
      %c0_15 = arith.constant 0 : index
      %18 = vector.load %arg3[%c0_14, %c0_15] : memref<16x128xbf16, #tpu.memory_space<vmem>>, vector<16x128xbf16>
      %c0_16 = arith.constant 0 : index
      %c0_17 = arith.constant 0 : index
      %19 = vector.load %arg6[%c0_16, %c0_17] : memref<128x128xbf16, #tpu.memory_space<vmem>>, vector<128x128xbf16>
      %cst_18 = arith.constant dense<0.000000e+00> : vector<16x128xf32>
      %20 = tpu.matmul %18, %19, %cst_18 {dimension_numbers = #tpu.dot_dimension_numbers<[1], [0], [0], [1], [0, 0, 1, 1], [], []>} : vector<16x128xbf16>, vector<128x128xbf16>, vector<16x128xf32> -> vector<16x128xf32>
      %21 = arith.negf %20 : vector<16x128xf32>
      %22 = math.exp %21 : vector<16x128xf32>
      %cst_19 = arith.constant 1.000000e+00 : f32
      %23 = vector.broadcast %cst_19 : f32 to vector<16x128xf32>
      %24 = arith.addf %23, %22 : vector<16x128xf32>
      %25 = arith.divf %23, %24 : vector<16x128xf32>
      %c0_20 = arith.constant 0 : index
      %c0_21 = arith.constant 0 : index
      %26 = vector.load %arg8[%c0_20, %c0_21] : memref<16x128xf32, #tpu.memory_space<vmem>>, vector<16x128xf32>
      %27 = arith.mulf %25, %26 : vector<16x128xf32>
      %c0_22 = arith.constant 0 : index
      %c0_23 = arith.constant 0 : index
      %28 = vector.load %arg7[%c0_22, %c0_23] : memref<16x128xf32, #tpu.memory_space<vmem>>, vector<16x128xf32>
      tpu.vector_store %arg7[%c0_22, %c0_23], %27 {strides = array<i32>} : memref<16x128xf32, #tpu.memory_space<vmem>>, vector<16x128xf32>,
    } else {
    }
    return
  }
  func.func @transform_0(%arg0: i32, %arg1: i32) -> (i32, i32) {
    %c0_i32 = arith.constant 0 : i32
    %c0_i32_0 = arith.constant 0 : i32
    return %arg0, %c0_i32 : i32, i32
  }
  func.func @transform_1(%arg0: i32, %arg1: i32) -> (i32, i32) {
    %c0_i32 = arith.constant 0 : i32
    %c0_i32_0 = arith.constant 0 : i32
    return %arg0, %c0_i32 : i32, i32
  }
  func.func @transform_2(%arg0: i32, %arg1: i32) -> (i32, i32) {
    %c0_i32 = arith.constant 0 : i32
    %c0_i32_0 = arith.constant 0 : i32
    return %c0_i32, %arg1 : i32, i32
  }
  func.func @transform_3(%arg0: i32, %arg1: i32) -> (i32, i32) {
    %c0_i32 = arith.constant 0 : i32
    %c0_i32_0 = arith.constant 0 : i32
    return %arg1, %c0_i32 : i32, i32
  }
  func.func @transform_4(%arg0: i32, %arg1: i32) -> (i32, i32) {
    %c0_i32 = arith.constant 0 : i32
    %c0_i32_0 = arith.constant 0 : i32
    %c0_i32_1 = arith.constant 0 : i32
    return %c0_i32, %c0_i32_0 : i32, i32
  }
  func.func @transform_5(%arg0: i32, %arg1: i32) -> (i32, i32) {
    %c0_i32 = arith.constant 0 : i32
    %c0_i32_0 = arith.constant 0 : i32
    return %arg0, %c0_i32 : i32, i32
  }
}

</mosaic_0001>

<bundles_post_ra>
// kernel: rwkv_channelmix.1
= control target key start
LH: loop header
LB: loop body
LE: loop exit
PB: predicated region body
PF: predicated region fallthrough
CT: control target
= control target key end

     0   :  { %v545_v0 = vmov 0.0   ;;  %vm546_vm0 = vmmov 0   ;;  %s691_s2 = inlined_call_operand.vmem [shape: bf16[128,128], index: 2, kind: input, shape index: {}]   ;;  %s692_s0 = inlined_call_operand.vmem [shape: bf16[16,128], index: 0, kind: input, shape index: {}]   ;;  %s693_s4 = inlined_call_operand.vmem [shape: bf16[128,128], index: 4, kind: input, shape index: {}]   ;;  %s694_s3 = inlined_call_operand.vmem [shape: bf16[128,128], index: 3, kind: input, shape index: {}]   ;;  %s695_s1 = inlined_call_operand.vmem [shape: bf16[16,128], index: 1, kind: input, shape index: {}]   ;;  %s696_s5 = inlined_call_operand.vmem [shape: f32[16,128], index: 5, kind: output, shape index: {}]  }
   0x1   :  { %449 = vmatprep.subr.bf16.mxu0 %v545_v0  ;;  %v511_v1 = vld [vmem:[%s691_s2 + $0x38] sm:$0xff]   ;;  %465 = vmatprep.mubr.msk.bf16.mxu0 %vm546_vm0, %v545_v0  ;;  %v512_v2 = vld [vmem:[%s691_s2 + $0x30] sm:$0xff]   ;;  %v513_v3 = vld [vmem:[%s691_s2 + $0x28] sm:$0xff]  }
   0x2   :  { %469 = vmatprep.subr.bf16.mxu1 %v545_v0  ;;  %485 = vmatprep.mubr.msk.bf16.mxu1 %vm546_vm0, %v545_v0  ;;  %v514_v4 = vld [vmem:[%s691_s2 + $0x20] sm:$0xff]   ;;  %v515_v5 = vld [vmem:[%s691_s2 + $0x18] sm:$0xff]   ;;  %v516_v6 = vld [vmem:[%s691_s2 + $0x10] sm:$0xff]  }
   0x3   :  { %450 = vmatpush3.bf16.msra.mxu0 %v511_v1  ;;  %v529_v7 = vld [vmem:[%s694_s3 + $0x38] sm:$0xff]   ;;  %v530_v8 = vld [vmem:[%s694_s3 + $0x30] sm:$0xff]   ;;  %v517_v9 = vld [vmem:[%s691_s2 + $0x8] sm:$0xff]  }
   0x4   :  { %451 = vmatprep.subr.bf16.mxu0 %v545_v0  ;;  %470 = vmatpush3.bf16.msra.mxu1 %v529_v7  ;;  %v531_v10 = vld [vmem:[%s694_s3 + $0x28] sm:$0xff]   ;;  %v518_v11 = vld [vmem:[%s691_s2] sm:$0xff]   ;;  %v520_v14 = vld [vmem:[%s693_s4 + $0x38] sm:$0xff]  }
   0x5   :  { %471 = vmatprep.subr.bf16.mxu1 %v545_v0  ;;  %v532_v12 = vld [vmem:[%s694_s3 + $0x20] sm:$0xff]   ;;  %v533_v15 = vld [vmem:[%s694_s3 + $0x18] sm:$0xff]   ;;  %v521_v16 = vld [vmem:[%s693_s4 + $0x30] sm:$0xff]  }
   0x6   :  { %v519_v13 = vld [vmem:[%s692_s0] sm:$0xff]   ;;  %v522_v17 = vld [vmem:[%s693_s4 + $0x28] sm:$0xff]   ;;  %v524_v19 = vld [vmem:[%s693_s4 + $0x18] sm:$0xff]  }
   0x7   :  { %452 = vmatpush3.bf16.msra.mxu0 %v512_v2  ;;  %v523_v18 = vld [vmem:[%s693_s4 + $0x20] sm:$0xff]   ;;  %v525_v20 = vld [vmem:[%s693_s4 + $0x10] sm:$0xff]   ;;  %v526_v21 = vld [vmem:[%s693_s4 + $0x8] sm:$0xff]  }
   0x8   :  { %453 = vmatprep.subr.bf16.mxu0 %v545_v0  ;;  %472 = vmatpush3.bf16.msra.mxu1 %v530_v8  ;;  %v527_v22 = vld [vmem:[%s693_s4] sm:$0xff]   ;;  %v534_v24 = vld [vmem:[%s694_s3 + $0x10] sm:$0xff]   ;;  %v535_v25 = vld [vmem:[%s694_s3 + $0x8] sm:$0xff]  }
   0x9   :  { %473 = vmatprep.subr.bf16.mxu1 %v545_v0  ;;  %v528_v23 = vld [vmem:[%s695_s1] sm:$0xff]  }
   0xa   :  { %v536_v26 = vld [vmem:[%s694_s3] sm:$0xff]  }
   0xb   :  { %454 = vmatpush3.bf16.msra.mxu0 %v513_v3 }
   0xc   :  { %455 = vmatprep.subr.bf16.mxu0 %v545_v0  ;;  %474 = vmatpush3.bf16.msra.mxu1 %v531_v10 }
   0xd   :  { %475 = vmatprep.subr.bf16.mxu1 %v545_v0 }
   0xf   :  { %456 = vmatpush3.bf16.msra.mxu0 %v514_v4 }
  0x10   :  { %457 = vmatprep.subr.bf16.mxu0 %v545_v0  ;;  %476 = vmatpush3.bf16.msra.mxu1 %v532_v12 }
  0x11   :  { %477 = vmatprep.subr.bf16.mxu1 %v545_v0 }
  0x13   :  { %458 = vmatpush3.bf16.msra.mxu0 %v515_v5 }
  0x14   :  { %459 = vmatprep.subr.bf16.mxu0 %v545_v0  ;;  %478 = vmatpush3.bf16.msra.mxu1 %v533_v15 }
  0x15   :  { %479 = vmatprep.subr.bf16.mxu1 %v545_v0 }
  0x17   :  { %460 = vmatpush3.bf16.msra.mxu0 %v516_v6 }
  0x18   :  { %461 = vmatprep.subr.bf16.mxu0 %v545_v0  ;;  %480 = vmatpush3.bf16.msra.mxu1 %v534_v24 }
  0x19   :  { %481 = vmatprep.subr.bf16.mxu1 %v545_v0 }
  0x1b   :  { %462 = vmatpush3.bf16.msra.mxu0 %v517_v9 }
  0x1c   :  { %463 = vmatprep.subr.bf16.mxu0 %v545_v0  ;;  %482 = vmatpush3.bf16.msra.mxu1 %v535_v25 }
  0x1d   :  { %483 = vmatprep.subr.bf16.mxu1 %v545_v0 }
  0x1f   :  { %464 = vmatpush3.bf16.msra.mxu0 %v518_v11 }
  0x20   :  { %489 = vmatprep.subr.bf16.mxu0 %v545_v0  ;;  %484 = vmatpush3.bf16.msra.mxu1 %v536_v26 }
  0x22   :  { %466 = vmatmul.mubr.bf16.vlgmr.msra.gmra.mxu0 %v519_v13 }
  0x23   :  { %490 = vmatpush3.bf16.msra.mxu0 %v520_v14  ;;  %505 = vmatprep.mubr.msk.bf16.mxu0 %vm546_vm0, %v545_v0 }
  0x24   :  { %491 = vmatprep.subr.bf16.mxu0 %v545_v0 }
  0x27   :  { %492 = vmatpush3.bf16.msra.mxu0 %v521_v16 }
  0x28   :  { %493 = vmatprep.subr.bf16.mxu0 %v545_v0 }
  0x2b   :  { %494 = vmatpush3.bf16.msra.mxu0 %v522_v17 }
  0x2c   :  { %495 = vmatprep.subr.bf16.mxu0 %v545_v0 }
  0x2f   :  { %496 = vmatpush3.bf16.msra.mxu0 %v523_v18 }
  0x30   :  { %497 = vmatprep.subr.bf16.mxu0 %v545_v0 }
  0x33   :  { %498 = vmatpush3.bf16.msra.mxu0 %v524_v19 }
  0x34   :  { %499 = vmatprep.subr.bf16.mxu0 %v545_v0 }
  0x37   :  { %500 = vmatpush3.bf16.msra.mxu0 %v525_v20 }
  0x38   :  { %501 = vmatprep.subr.bf16.mxu0 %v545_v0 }
  0x3b   :  { %502 = vmatpush3.bf16.msra.mxu0 %v526_v21 }
  0x3c   :  { %503 = vmatprep.subr.bf16.mxu0 %v545_v0 }
  0x3f   :  { %504 = vmatpush3.bf16.msra.mxu0 %v527_v22 }
  0x42   :  { %506 = vmatmul.mubr.bf16.vlgmr.msra.gmra.mxu0 %v528_v23 }
  0xe2   :  { %v133_v27 = vpop.f32.mrf.mxu0 }
  0xe3   :  { %v140_v29 = vmax.f32 %v133_v27, 0.0 }
  0xe4   :  { %v467_v28 = vpop.f32.mrf.mxu0 }
  0xe5   :  { %v142_v33 = vmul.f32 %v140_v29, %v140_v29 }
  0xe6   :  { %v136_v30 = vpop.f32.mrf.mxu0 }
  0xe7   :  { %v141_v31 = vmax.f32 %v136_v30, 0.0 }
  0xe8   :  { %v468_v32 = vpop.f32.mrf.mxu0 }
  0xe9   :  { %v143_v34 = vmul.f32 %v141_v31, %v141_v31 }
  0xeb   :  { %v146_v35 = vpack.c.bf16 %v143_v34, %v142_v33 }
  0xed   :  { %486 = vmatmul.mubr.bf16.vlgmr.msra.gmra.mxu1 %v146_v35 }
 0x102   :  { %v365_v36 = vpop.f32.mrf.mxu0 }
 0x103   :  { %v420_v40 = vmul.f32 -1.442695, %v365_v36 }
 0x104   :  { %v507_v37 = vpop.f32.mrf.mxu0 }
 0x105   :  { %537 = vpow2.f32 %v420_v40 }
 0x106   :  { %v368_v38 = vpop.f32.mrf.mxu0 }
 0x107   :  { %v421_v41 = vmul.f32 -1.442695, %v368_v38 }
 0x108   :  { %v508_v39 = vpop.f32.mrf.mxu0 }
 0x109   :  { %539 = vpow2.f32 %v421_v41 }
 0x112   :  { %v538_v42 = vpop.eup %537 }
 0x113   :  { %v378_v43 = vadd.f32 1.0, %v538_v42 }
 0x115   :  { %541 = vrcp.f32 %v378_v43 }
 0x116   :  { %v540_v44 = vpop.eup %539 }
 0x117   :  { %v379_v45 = vadd.f32 1.0, %v540_v44 }
 0x119   :  { %543 = vrcp.f32 %v379_v45 }
 0x122   :  { %v542_v46 = vpop.eup %541 }
 0x126   :  { %v544_v50 = vpop.eup %543 }
 0x1ad   :  { %v245_v47 = vpop.f32.mrf.mxu1 }
 0x1ae   :  { %v386_v48 = vmul.f32 %v542_v46, %v245_v47 }
 0x1af   :  { %v487_v49 = vpop.f32.mrf.mxu1 }
 0x1b0   :  { %388 = vst [vmem:[%s696_s5] sm:$0xff] %v386_v48 }
 0x1b1   :  { %v248_v51 = vpop.f32.mrf.mxu1 }
 0x1b2   :  { %v387_v52 = vmul.f32 %v544_v50, %v248_v51 }
 0x1b3   :  { %v488_v53 = vpop.f32.mrf.mxu1 }
 0x1b4   :  { %389 = vst [vmem:[%s696_s5 + $0x8] sm:$0xff] %v387_v52 }

</bundles_post_ra>
